<compile_context>
chip_gen: v6e
topology: v6e:2x2x1
jax: 0.10.0
libtpu: 0.0.40
codegen_flags: <defaults>
</compile_context>

<pallas_src>
import math

import jax
import jax.numpy as jnp
from jax.experimental import pallas as pl
from jax.experimental.pallas import tpu as pltpu


def _round_up(v, m):
    return -(-v // m) * m


def _pick_tn(N, C, itemsize):
    """Dtype-aware batch pack.

    Input rows (TN*C) must fill whole sublane groups: multiples of 8 for f32,
    16 for bf16, 32 for int8/fp8.  Where N allows, grow TN to `pack` itself so
    the (TN, THW) output rows also fill whole vregs (dense, unmasked vst).
    """
    pack = max(8, 32 // max(itemsize, 1))   # rows per packed 32-bit sublane group
    base = pack // math.gcd(pack, C)        # smallest TN with (TN*C) % pack == 0
    best = None
    tn = base
    while tn <= N:
        if N % tn == 0:
            best = tn
            if tn >= pack:                  # output rows are now dense too; stop
                break
        tn += base
    if best is None:
        best = N                            # whole batch: block dim == full dim -> legal
    return best, pack


def _pick_thw(HW, row_bytes, target_block_bytes, min_spatial_tiles):
    """Largest lane-dense HW tile (multiple of 128, or full HW) such that
    (a) the x block stays within the per-block VMEM budget and
    (b) HW splits into >= min_spatial_tiles blocks where possible (v7x megacore:
        keep the total grid comfortably > 2 so both TensorCores get work).
    Prefers exact divisors of HW so the last tile is not ragged/masked."""
    budget = max(128, (target_block_bytes // max(row_bytes, 1)) // 128 * 128)
    by_grid = max(128, _round_up(pl.cdiv(HW, min_spatial_tiles), 128))
    cap = min(budget, by_grid)
    if HW <= cap:
        return HW                           # full row: always layout-legal
    t = min(cap, (HW // 128) * 128)
    for cand in range(t, 127, -128):        # prefer an exact divisor of HW
        if HW % cand == 0:
            return cand
    # Non-dividing tile: Pallas masks the ragged last tile.  Safe here because
    # every lane (spatial position) is independent: the matmul contracts over
    # sublanes only and the padded output lanes are never written back.  Revisit
    # before adding any cross-lane op (e.g. a reduction over THW) to this kernel.
    return t


def _make_channel_squeeze_kernel(TN):
    def kernel(x_ref, r_ref, b_ref, o_ref):
        # x_ref: (TN*C, THW) VMEM -- TN batch elements, C channel rows each (dense).
        # r_ref: (RROWS, TN*C) VMEM -- block-diagonal conv1x1 weights, R[j, j*C+c] = w[c].
        # b_ref: (1,)  SMEM        -- conv1x1 bias.
        # o_ref: (TN, THW)
        #
        # Dense full-block channel reduction on the (otherwise idle) MXU: one dot
        # consumes the whole block, zero VALU ops per input element, f32 accumulate,
        # no single-sublane slicing, dense (TN, THW) result for the output store.
        acc = jnp.dot(
            r_ref[...],
            x_ref[...].astype(r_ref.dtype),
            preferred_element_type=jnp.float32,
            precision=jax.lax.Precision.HIGHEST,  # exact f32 passes; MXU has huge headroom
        )
        z = acc + b_ref[0]
        # sigmoid(z) = 0.5*tanh(z/2) + 0.5: single EUP op + one mul/add on the VPU,
        # keeps the epilogue off the VPU divide path and is exact.
        y = 0.5 * jnp.tanh(0.5 * z) + 0.5
        o_ref[...] = y[:TN].astype(o_ref.dtype)   # drop the zero-padded R rows

    return kernel


def channel_squeeze(x, weight, bias, *,
                    target_block_bytes=8 * 1024 * 1024,
                    input_buffer_count=None,
                    min_grid_blocks=8):
    """ChannelSqueeze forward.

    x: (N, C, H, W); weight: (1, C, 1, 1); bias: (1,)  ->  (N, 1, H, W).
    """
    N, C, H, W = x.shape
    HW = H * W
    itemsize = jnp.dtype(x.dtype).itemsize

    TN, pack = _pick_tn(N, C, itemsize)
    batch_blocks = N // TN
    min_spatial_tiles = max(1, pl.cdiv(min_grid_blocks, batch_blocks))
    THW = _pick_thw(HW, TN * C * itemsize, target_block_bytes, min_spatial_tiles)
    grid = (batch_blocks, pl.cdiv(HW, THW))

    # Dense 2-D layouts: sublanes = N*C rows (no channel padding even when C < 8),
    # lanes = flattened spatial.  Output is 2-D (N, HW) -> dense full-block stores.
    x2d = x.reshape(N * C, HW)

    # Block-diagonal conv1x1 weight matrix, zero-padded to >= 8 rows for the MXU.
    r_dtype = x.dtype if jnp.issubdtype(x.dtype, jnp.floating) else jnp.float32
    RROWS = max(8, _round_up(TN, 8))
    w1d = weight.reshape(C).astype(jnp.float32)
    r = (jnp.eye(TN, dtype=jnp.float32)[:, :, None] * w1d[None, None, :]).reshape(TN, TN * C)
    r = jnp.pad(r, ((0, RROWS - TN), (0, 0))).astype(r_dtype)
    b1d = bias.reshape(1).astype(jnp.float32)

    # Explicit scoped-VMEM limit: big blocks exceed v5e's 16 MiB scoped default;
    # stay well under v7x's 64 MiB physical VMEM per TensorCore (< ~48 MiB), and
    # comfortably inside v5e/v6e's 128 MiB physical.
    nbuf = input_buffer_count if input_buffer_count is not None else 2
    in_blk = _round_up(TN * C, pack) * _round_up(THW, 128) * itemsize
    out_blk = _round_up(TN, pack) * _round_up(THW, 128) * itemsize
    r_blk = _round_up(RROWS, 32) * _round_up(TN * C, 128) * jnp.dtype(r_dtype).itemsize
    vmem_needed = nbuf * in_blk + 2 * (out_blk + r_blk)
    vmem_limit = int(min(48 << 20, max(16 << 20, vmem_needed + (8 << 20))))

    x_spec_kwargs = {}
    if input_buffer_count is not None and input_buffer_count != 2:
        # Deepen input pipelining instead of shrinking blocks when per-step DMAs
        # are short (small images / large C); budgeted for in vmem_limit above.
        x_spec_kwargs["pipeline_mode"] = pl.Buffered(input_buffer_count)
    x_spec = pl.BlockSpec((TN * C, THW), lambda n, t: (n, t), **x_spec_kwargs)

    cost = pl.CostEstimate(
        flops=2 * N * C * HW,
        transcendentals=N * HW,
        bytes_accessed=N * C * HW * itemsize + N * HW * itemsize
        + (RROWS * TN * C + 1) * 4,
    )

    out2d = pl.pallas_call(
        _make_channel_squeeze_kernel(TN),
        out_shape=jax.ShapeDtypeStruct((N, HW), x.dtype),
        grid_spec=pltpu.PrefetchScalarGridSpec(
            num_scalar_prefetch=0,
            grid=grid,
            in_specs=[
                x_spec,
                pl.BlockSpec((RROWS, TN * C), lambda n, t: (0, 0)),  # resident weights
                pl.BlockSpec(memory_space=pltpu.SMEM),               # bias (1,)
            ],
            out_specs=pl.BlockSpec((TN, THW), lambda n, t: (n, t)),
        ),
        compiler_params=pltpu.CompilerParams(
            dimension_semantics=("parallel", "parallel"),
            vmem_limit_bytes=vmem_limit,
        ),
        cost_estimate=cost,
    )(x2d, r, b1d)

    return out2d.reshape(N, 1, H, W)


if __name__ == "__main__":
    N, C, H, W = 2, 4, 16, 16

    key = jax.random.PRNGKey(0)
    kx, kw, kb = jax.random.split(key, 3)

    x = jax.random.normal(kx, (N, C, H, W), dtype=jnp.float32)

    # Deterministic Conv2d(in=C, out=1, k=1) parameters (PyTorch-style uniform
    # init with bound 1/sqrt(fan_in)).
    fan_in = C
    bound = 1.0 / math.sqrt(fan_in)
    weight = jax.random.uniform(kw, (1, C, 1, 1), dtype=jnp.float32,
                                minval=-bound, maxval=bound)
    bias = jax.random.uniform(kb, (1,), dtype=jnp.float32,
                              minval=-bound, maxval=bound)

    out = channel_squeeze(x, weight, bias)
    out = jax.block_until_ready(out)

    # Exact elementwise reference (no matmul -> bit-accurate f32 math).
    ref = jax.nn.sigmoid(
        jnp.sum(x * weight.reshape(1, C, 1, 1), axis=1, keepdims=True)
        + bias.reshape(1, 1, 1, 1)
    )
    assert out.shape == (N, 1, H, W)
    # Tolerance leaves slack for MXU f32 pass decomposition / EUP-tanh sigmoid;
    # with Precision.HIGHEST the observed error is ~1e-6.
    assert jnp.allclose(out, ref, atol=2e-3, rtol=2e-3), float(
        jnp.max(jnp.abs(out - ref)))

    print("KERNEL_OK")
</pallas_src>

<mosaic_0001>
module attributes {stable_mosaic.version = 11 : i64} {
  func.func @kernel(%arg0: i32, %arg1: i32, %arg2: memref<8x128xf32, #tpu.memory_space<vmem>>, %arg3: memref<8x8xf32, #tpu.memory_space<vmem>>, %arg4: memref<1xf32, #tpu.memory_space<smem>>, %arg5: memref<2x128xf32, #tpu.memory_space<vmem>>) attributes {dimension_semantics = [#tpu.dimension_semantics<parallel>, #tpu.dimension_semantics<parallel>], iteration_bounds = array<i64: 1, 2>, scalar_prefetch = 0 : i64, scratch_operands = 0 : i64, tpu.core_type = #tpu.core_type<tc>, window_params = [{transform_indices = @transform_0, window_bounds = array<i64: 8, 128>}, {pipeline_mode = #tpu.pipeline_mode<synchronous>, transform_indices = @transform_1, window_bounds = array<i64: 8, 8>}, {transform_indices = @transform_2, window_bounds = array<i64: 1>}, {transform_indices = @transform_3, window_bounds = array<i64: 2, 128>}]} {
    %c0 = arith.constant 0 : index
    %c0_0 = arith.constant 0 : index
    %0 = vector.load %arg3[%c0, %c0_0] : memref<8x8xf32, #tpu.memory_space<vmem>>, vector<8x8xf32>
    %c0_1 = arith.constant 0 : index
    %c0_2 = arith.constant 0 : index
    %1 = vector.load %arg2[%c0_1, %c0_2] : memref<8x128xf32, #tpu.memory_space<vmem>>, vector<8x128xf32>
    %cst = arith.constant dense<0.000000e+00> : vector<8x128xf32>
    %2 = tpu.matmul %0, %1, %cst {dimension_numbers = #tpu.dot_dimension_numbers<[1], [0], [0], [1], [0, 0, 1, 1], [], []>, precision = #tpu.contract_precision<fp32>} : vector<8x8xf32>, vector<8x128xf32>, vector<8x128xf32> -> vector<8x128xf32>
    %c0_3 = arith.constant 0 : index
    %3 = memref.load %arg4[%c0_3] : memref<1xf32, #tpu.memory_space<smem>>
    %4 = vector.broadcast %3 : f32 to vector<8x128xf32>
    %5 = arith.addf %2, %4 : vector<8x128xf32>
    %cst_4 = arith.constant 5.000000e-01 : f32
    %6 = vector.broadcast %cst_4 : f32 to vector<8x128xf32>
    %7 = arith.mulf %6, %5 : vector<8x128xf32>
    %8 = math.tanh %7 : vector<8x128xf32>
    %cst_5 = arith.constant 5.000000e-01 : f32
    %9 = vector.broadcast %cst_5 : f32 to vector<8x128xf32>
    %10 = arith.mulf %9, %8 : vector<8x128xf32>
    %cst_6 = arith.constant 5.000000e-01 : f32
    %11 = vector.broadcast %cst_6 : f32 to vector<8x128xf32>
    %12 = arith.addf %10, %11 : vector<8x128xf32>
    %13 = vector.extract_strided_slice %12 {offsets = [0, 0], sizes = [2, 128], strides = [1, 1]} : vector<8x128xf32> to vector<2x128xf32>
    %c0_7 = arith.constant 0 : index
    %c0_8 = arith.constant 0 : index
    %14 = vector.load %arg5[%c0_7, %c0_8] : memref<2x128xf32, #tpu.memory_space<vmem>>, vector<2x128xf32>
    tpu.vector_store %arg5[%c0_7, %c0_8], %13 {strides = array<i32>} : memref<2x128xf32, #tpu.memory_space<vmem>>, vector<2x128xf32>,
    return
  }
  func.func @transform_0(%arg0: i32, %arg1: i32) -> (i32, i32) {
    %c0_i32 = arith.constant 0 : i32
    return %arg0, %arg1 : i32, i32
  }
  func.func @transform_1(%arg0: i32, %arg1: i32) -> (i32, i32) {
    %c0_i32 = arith.constant 0 : i32
    %c0_i32_0 = arith.constant 0 : i32
    %c0_i32_1 = arith.constant 0 : i32
    return %c0_i32, %c0_i32_0 : i32, i32
  }
  func.func @transform_2(%arg0: i32, %arg1: i32) -> i32 {
    %c0_i32 = arith.constant 0 : i32
    %c0_i32_0 = arith.constant 0 : i32
    return %c0_i32 : i32
  }
  func.func @transform_3(%arg0: i32, %arg1: i32) -> (i32, i32) {
    %c0_i32 = arith.constant 0 : i32
    return %arg0, %arg1 : i32, i32
  }
}

</mosaic_0001>

<bundles_post_ra>
// kernel: tpu_custom_call.1
= control target key start
LH: loop header
LB: loop body
LE: loop exit
PB: predicated region body
PF: predicated region fallthrough
CT: control target
= control target key end

     0   :  { %s1255_s0 = inlined_call_operand.hbm [shape: f32[8,256], index: 0, kind: input, shape index: {}]   ;;  %s1256_s1 = inlined_call_operand.hbm [shape: f32[8,8], index: 1, kind: input, shape index: {}]   ;;  %s1257_s2 = inlined_call_operand.<no memory space> [shape: f32[1], index: 2, kind: input, shape index: {}]   ;;  %s1258_s3 = inlined_call_operand.hbm [shape: f32[2,256], index: 3, kind: output, shape index: {}]  }
   0x1   :  { %8 = sst [smem:[#allocation2]] %s1257_s2 }
   0x2   :  { %9 = vsyncpa [#allocation4], 0 }
   0x3   :  { %11 = vsyncpa [#allocation4 + $0x1], 0 }
   0x4   :  { %12 = vsyncpa [#allocation7], 0 }
   0x5   :  { %13 = vsyncpa [#allocation5], 0 }
   0x6   :  { %15 = vsyncpa [#allocation5 + $0x1], 0  ;;  %s1087_s14 = smov 0   ;;  %s1089_s15 = smov 0  }
   0x7   :  { %s1091_s16 = smov 0   ;;  %s1093_s17 = smov 0  }
   0x8   :  { %s1095_s18 = smov 0   ;;  %s1097_s19 = smov 0  }
   0x9 LB: > { %s785_s2 = sadd.s32 4294967295, %s1057_s19   ;;  %s786_s20 = sadd.s32 4294967294, %s1057_s19   ;;  %s1057_s19 = sphi %s1097_s19, %s21_s19   ;;  %s1053_s18 = sphi %s1095_s18, %s1275_s18   ;;  %s1049_s17 = sphi %s1093_s17, %s1274_s17   ;;  %s1045_s16 = sphi %s1091_s16, %s1273_s16   ;;  %s1041_s15 = sphi %s1089_s15, %s1272_s15   ;;  %s1037_s14 = sphi %s1087_s14, %s1271_s14  }
   0xa   : > { %p55_p0 = scmp.ne.s32.totalorder %s1041_s15, %s1037_s14  ;;  %p1121_p1 = scmp.eq.s32.totalorder %s785_s2, 0 }
   0xb   : > { %p1125_p2 = scmp.eq.s32.totalorder %s785_s2, 1  ;;  %p129_p3 = scmp.eq.s32.totalorder %s786_s20, 1 }
   0xc   : > { %p1131_p4 = por %p1121_p1, %p55_p0  ;;  %p787_p5 = scmp.ge.s32.totalorder %s1057_s19, 1 }
   0xd   : > { %p1136_p6 = por %p129_p3, %p55_p0  ;;  %p136_p7 = scmp.lt.s32.totalorder %s1057_s19, 3 }
   0xe   : > { %s1262_s23 = scalar_select %p1131_p4, 1, 0 }
   0xf   : > { %s1263_s24 = scalar_select %p1136_p6, 1, 0 }
  0x10   : > { %p1141_p8 = pnand %p787_p5, %p136_p7  ;;  %s1059_s26 = smov [#allocation6]  }
  0x11   : > { %s149_s27 = sshll.u32 %s1059_s26, 4  ;;  %s30_s29 = sadd.s32 1, %s1053_s18  ;;  %s150_s27 = int_to_ptr.vmem [resolvable:$true] %s149_s27 }
  0x12   : > { %p850_p10 = pneg %p1141_p8  ;;  %s42_s30 = sadd.s32 1, %s1045_s16 }
  0x13   : > { %p31_p12 = scmp.ge.s32.totalorder %s30_s29, 2  ;;  %s930_s4 = scalar_lea.vmem %s150_s27, 128 }
  0x14   : > { %p1150_p11 = pnand %p850_p10, %p1121_p1  ;;  %p931_p0 = scmp.ne.s32.totalorder %s150_s27, %s930_s4 }
  0x15   : > { %p938_p7 = scmp.lt.s32.totalorder %s150_s27, %s150_s27  ;;  %p939_p6 = scmp.lt.s32.totalorder %s930_s4, %s930_s4 }
  0x16   : > { %p921_p13 = pneg %p1150_p11 }
  0x17   : > { %p940_p9 = por %p939_p6, %p938_p7 }
  0x18   : > { %p933_p3 = pnand %p931_p0, %p921_p13 }
  0x1a   : > { %p934_p5 = pneg %p933_p3 }
  0x1c   : > { %p941_p4 = pnand %p940_p9, %p934_p5 }
  0x1e   : > { %944 = shalt.err (!%p941_p4)
}
  0x1f   : > { %853 = dma.hbm_to_vmem [thread:$0]  (!%p1150_p11), %s1256_s1, 128, %s150_s27, [#allocation7]  }
  0x20   : > { %s1277_s29 = smov (%p31_p12, %s30_s29), 0  ;;  %p49_p6 = scmp.ne.s32.totalorder %s1045_s16, %s1041_s15 }
  0x21   : > { %p50_p4 = scmp.eq.s32.totalorder %s1057_s19, 0  ;;  %s38_s7 = ssub.s32 %s1053_s18, %s1277_s29 }
  0x22   : > { %p863_p9 = scmp.lt.s32.totalorder %s1057_s19, 2  ;;  %p40_p10 = scmp.eq.s32.totalorder %s38_s7, 0 }
  0x23   : > { %p51_p13 = por %p50_p4, %p49_p6  ;;  %p1173_p0 = por %p1125_p2, %p49_p6 }
  0x24   : > { %s163_s9 = sand.u32 1, %s1045_s16   ;;  %s791_s12 = sshll.u32 %s1053_s18, 7 }
  0x25   : > { %s1179_s10 = scalar_select %p40_p10, %s1045_s16, %s42_s30  }
  0x26   : > { %s790_s11 = sshll.u32 %s163_s9, 3  ;;  %s174_s20 = scalar_lea.hbm %s1255_s0, %s791_s12 }
  0x27   : > { %s167_s26 = scalar_lea.vmem [#allocation3], %s790_s11  ;;  %p1185_p11 = pnand %p863_p9, %p51_p13 }
  0x28   : > { %s176_s27 = sshll.u32 %s167_s26, 4  ;;  %s164_s22 = scalar_lea.sflag [#allocation4], %s163_s9  ;;  %s177_s27 = int_to_ptr.vmem [resolvable:$true] %s176_s27 }
  0x29   : > { %p947_p2 = pneg %p1185_p11  ;;  %s958_s4 = scalar_lea.vmem %s177_s27, 128 }
  0x2a   : > { %p959_p12 = scmp.ne.s32.totalorder %s177_s27, %s958_s4  ;;  %s1060_s30 = smov [#allocation3]  }
  0x2b   : > { %s963_s5 = sshll.u32 %s1060_s30, 4  ;;  %s964_s5 = int_to_ptr.vmem [resolvable:$false] %s963_s5 }
  0x2c   : > { %p961_p3 = pnand %p959_p12, %p947_p2  ;;  %s965_s6 = scalar_lea.vmem %s964_s5, 256 }
  0x2d   : > { %p966_p7 = scmp.lt.s32.totalorder %s177_s27, %s964_s5  ;;  %p967_p6 = scmp.lt.s32.totalorder %s965_s6, %s958_s4 }
  0x2e   : > { %p962_p5 = pneg %p961_p3 }
  0x2f   : > { %p968_p4 = por %p967_p6, %p966_p7 }
  0x31   : > { %p969_p10 = pnand %p968_p4, %p962_p5 }
  0x33   : > { %972 = shalt.err (!%p969_p10)
}
  0x34   : > { %857 = dma.hbm_to_vmem [thread:$0]  (!%p1185_p11), %s174_s20, 128, %s177_s27, %s164_s22  }
  0x35   : > { %185 = sbr.rel (%p1141_p8) target bundleno = 312 (0x138), region = 32  ;;  %s1196_s7 = sand.u32 (!%p1141_p8), 1, %s1041_s15  }
  0x36   : > { %s793_s9 = sshll.u32 (!%p1141_p8), %s1196_s7, 3  ;;  %s188_s11 = scalar_lea.sflag (!%p1141_p8), [#allocation4], %s1196_s7 }
  0x37   : > { %s191_s12 = scalar_lea.vmem (!%p1141_p8), [#allocation3], %s793_s9  ;;  %p1268_p9 = scmp.ne.s32.totalorder (!%p1141_p8), %s1262_s23, 0 }
  0x3a   : > { %1024 = dma.done.wait (%p1268_p9), %s188_s11, 128  }
  0x3b   : > { %1026 = vsyncadd (%p1268_p9), %s188_s11, 4294967168 }
  0x3c   : > { %1028 = dma.done.wait (%p1121_p1), [#allocation7], 128  }
  0x3d   : > { %1030 = vsyncadd (%p1121_p1), [#allocation7], 4294967168  ;;  %v1061_v0 = vmov 0.0   ;;  %vm1062_vm0 = vmmov 0   ;;  %vm222_vm1 = vcmask 64512   ;;  %v219_v1 = vld [vmem:[%s191_s12] sm:$0xff] }
  0x3e   : > { %812 = vmatprep.subr.mxu0 %v1061_v0  ;;  %817 = vmatprep.subr.mxu1 %v1061_v0  ;;  %v218_v2 = vld [vmem:[#allocation6] sm:$0xff]  ;;  %v257_v3 = vand.u32 4294901760, %v219_v1  ;;  %s220_s21 = sld [smem:[#allocation2]]  ;;  %s795_s23 = sshll.u32 %s1196_s7, 1 }
  0x3f   : > { %814 = vmatprep.mubr.msk.f32.mxu0 %vm1062_vm0, %v1061_v0  ;;  %819 = vmatprep.mubr.msk.f32.mxu1 %vm1062_vm0, %v1061_v0  ;;  %v224_v4 = vsel %vm222_vm1, %v218_v2, 0  ;;  %s797_s25 = sshll.u32 %s1049_s17, 5  ;;  %s217_s13 = scalar_lea.vmem [#allocation8], %s795_s23 }
  0x40   : > { %v292_v5 = vand.u32 4294901760, %v224_v4  ;;  %813 = vmatpush3.msra.mxu0 %v257_v3  ;;  %v334_v6 = vsub.f32 %v219_v1, %v257_v3  ;;  %s693_s2 = sshll.u32 %s217_s13, 4  ;;  %s691_s27 = scalar_lea.hbm %s1258_s3, %s797_s25  ;;  %s694_s2 = int_to_ptr.vmem [resolvable:$true] %s693_s2 }
  0x41   : > { %822 = vmatprep.subr.mxu0 %v1061_v0  ;;  %s678_s28 = scalar_lea.sflag [#allocation5], %s1196_s7  ;;  %s973_s22 = scalar_lea.vmem %s694_s2, 32 }
  0x42   : > { %v293_v7 = vsub.f32 %v224_v4, %v292_v5  ;;  %v335_v8 = vand.u32 4294901760, %v334_v6  ;;  %p974_p1 = scmp.ne.s32.totalorder %s694_s2, %s973_s22  ;;  %s1063_s4 = smov [#allocation8]  }
  0x43   : > { %s977_s30 = sshll.u32 %s1063_s4, 4  ;;  %s978_s30 = int_to_ptr.vmem [resolvable:$false] %s977_s30 }
  0x44   : > { %v294_v9 = vand.u32 4294901760, %v293_v7  ;;  %v336_v10 = vsub.f32 %v334_v6, %v335_v8  ;;  %v221_v14 = vstv %s220_s21  ;;  %p975_p8 = pnand %p974_p1, %p1173_p0  ;;  %s979_s17 = scalar_lea.vmem %s978_s30, 64 }
  0x45   : > { %p980_p11 = scmp.lt.s32.totalorder %s694_s2, %s978_s30  ;;  %p981_p2 = scmp.lt.s32.totalorder %s979_s17, %s973_s22 }
  0x46   : > { %v295_v11 = vsub.f32 %v293_v7, %v294_v9  ;;  %v337_v12 = vand.u32 4294901760, %v336_v10  ;;  %p976_p13 = pneg %p975_p8 }
  0x47   : > { %p982_p12 = por %p981_p2, %p980_p11 }
  0x48   : > { %v296_v13 = vand.u32 4294901760, %v295_v11  ;;  %818 = vmatpush3.msra.mxu1 %v337_v12 }
  0x49   : > { %820 = vmatmul.mubr.f32.vlgmr.msra.gmra.mxu1 %v292_v5  ;;  %827 = vmatprep.subr.mxu1 %v1061_v0  ;;  %p983_p3 = pnand %p982_p12, %p976_p13 }
  0x4a   : > { %815 = vmatmul.mubr.f32.vlgmr.msra.gmra.mxu0 %v296_v13  ;;  %828 = vmatpush3.msra.mxu1 %v257_v3 }
  0x4b   : > { %823 = vmatpush3.msra.mxu0 %v334_v6  ;;  %824 = vmatprep.mubr.msk.f32.mxu0 %vm1062_vm0, %v1061_v0 }
  0x4c   : > { %829 = vmatprep.mubr.msk.f32.mxu1 %vm1062_vm0, %v1061_v0  ;;  %832 = vmatprep.subr.mxu0 %v1061_v0 }
  0x4d   : > { %830 = vmatmul.mubr.f32.vlgmr.msra.gmra.mxu1 %v294_v9  ;;  %837 = vmatprep.subr.mxu1 %v1061_v0 }
  0x4e   : > { %825 = vmatmul.mubr.f32.vlgmr.msra.gmra.mxu0 %v293_v7  ;;  %838 = vmatpush3.msra.mxu1 %v257_v3 }
  0x4f   : > { %833 = vmatpush3.msra.mxu0 %v335_v8  ;;  %834 = vmatprep.mubr.msk.f32.mxu0 %vm1062_vm0, %v1061_v0 }
  0x50   : > { %839 = vmatprep.mubr.msk.f32.mxu1 %vm1062_vm0, %v1061_v0 }
  0x51   : > { %840 = vmatmul.mubr.f32.vlgmr.msra.gmra.mxu1 %v292_v5 }
  0x52   : > { %835 = vmatmul.mubr.f32.vlgmr.msra.gmra.mxu0 %v292_v5 }
 0x109   : > { %v374_v16 = vpop.f32.mrf.mxu1 }
 0x10a   : > { %v298_v15 = vpop.f32.mrf.mxu0 }
 0x10b   : > { %v299_v17 = vadd.f32 %v298_v15, %v221_v14  ;;  %v821_v19 = vpop.f32.mrf.mxu1 }
 0x10c   : > { %v816_v18 = vpop.f32.mrf.mxu0 }
 0x10d   : > { %v375_v20 = vadd.f32 %v374_v16, %v299_v17  ;;  %v522_v22 = vpop.f32.mrf.mxu1 }
 0x10e   : > { %v448_v21 = vpop.f32.mrf.mxu0 }
 0x10f   : > { %v449_v23 = vadd.f32 %v448_v21, %v375_v20  ;;  %v831_v25 = vpop.f32.mrf.mxu1 }
 0x110   : > { %v826_v24 = vpop.f32.mrf.mxu0 }
 0x111   : > { %v523_v26 = vadd.f32 %v522_v22, %v449_v23  ;;  %v668_v28 = vpop.f32.mrf.mxu1 }
 0x112   : > { %v596_v27 = vpop.f32.mrf.mxu0 }
 0x113   : > { %v597_v29 = vadd.f32 %v596_v27, %v523_v26  ;;  %v841_v31 = vpop.f32.mrf.mxu1 }
 0x114   : > { %v836_v30 = vpop.f32.mrf.mxu0 }
 0x115   : > { %v669_v32 = vadd.f32 %v668_v28, %v597_v29 }
 0x117   : > { %v672_v33 = vmul.f32 0.5, %v669_v32 }
 0x119   : > { %917 = vtanh.f32 %v672_v33 }
 0x126   : > { %v918_v34 = vpop.eup %917 }
 0x127   : > { %v674_v35 = vmul.f32 0.5, %v918_v34 }
 0x129   : > { %v675_v36 = vadd.f32 0.5, %v674_v35 }
 0x12b   : > { %676 = vst [vmem:[%s217_s13] sm:$0x3] %v675_v36 }
 0x12c   : > { %986 = shalt.err (!%p983_p3)
}
 0x12d   : > { %s987_s5 = scalar_lea.hbm %s691_s27, 32  ;;  %s991_s9 = scalar_lea.hbm %s1258_s3, 64 }
 0x12e   : > { %p988_p5 = scmp.ne.s32.totalorder %s691_s27, %s987_s5  ;;  %p992_p4 = scmp.lt.s32.totalorder %s691_s27, %s1258_s3 }
 0x12f   : > { %p993_p10 = scmp.lt.s32.totalorder %s991_s9, %s987_s5 }
 0x130   : > { %p989_p7 = pnand %p988_p5, %p1173_p0 }
 0x131   : > { %p994_p9 = por %p993_p10, %p992_p4 }
 0x132   : > { %p990_p6 = pneg %p989_p7 }
 0x134   : > { %p995_p1 = pnand %p994_p9, %p990_p6 }
 0x136   : > { %998 = shalt.err (!%p995_p1)
}
 0x137   : > { %848 = dma.vmem_to_hbm [thread:$0]  (%p1173_p0), %s694_s2, 32, %s691_s27, %s678_s28  }
 0x138 PF: > { %s705_s21 = sand.u32 1, %s1037_s14   ;;  %p1269_p8 = scmp.ne.s32.totalorder %s1263_s24, 0 }
 0x139   : > { %p1270_p13 = scmp.ge.s32.totalorder %s1057_s19, 2  ;;  %s706_s23 = scalar_lea.sflag [#allocation5], %s705_s21 }
 0x13b   : > { %p859_p11 = pnand %p1270_p13, %p1269_p8 }
 0x13d   : > { %p860_p2 = pneg %p859_p11 }
 0x13f   : > { %1032 = dma.done.wait (%p860_p2), %s706_s23, 32  }
 0x140   : > { %1034 = vsyncadd (%p860_p2), %s706_s23, 4294967264  ;;  %s21_s19 = sadd.s32 1, %s1057_s19   ;;  %s1271_s14 = smov %s1041_s15 }
 0x141   : > { %p18_p12 = scmp.ge.s32.totalorder %s21_s19, 4   ;;  %s1272_s15 = smov %s1045_s16 }
 0x142   : > { %s1273_s16 = smov %s1179_s10  ;;  %s1274_s17 = smov %s1053_s18 }
 0x143   : > { %s1275_s18 = smov %s1277_s29  ;;  %20 = sbr.rel (!%p18_p12) target bundleno = 9 (0x9), region = 81 }
 0x148   :  { %711 = vsyncpa [#allocation4], 1 }
 0x149   :  { %713 = vsyncpa [#allocation4 + $0x1], 1 }
 0x14a   :  { %714 = vsyncpa [#allocation7], 1 }
 0x14b   :  { %715 = vsyncpa [#allocation5], 1 }
 0x14c   :  { %717 = vsyncpa [#allocation5 + $0x1], 1 }

</bundles_post_ra>
